<compile_context>
chip_gen: v5e
topology: v5e:2x2
jax: 0.10.0
libtpu: 0.0.40
codegen_flags: <defaults>
</compile_context>

<pallas_src>
import functools

import jax
import jax.numpy as jnp
from jax import lax
from jax.experimental import pallas as pl
from jax.experimental.pallas import tpu as pltpu


def _sep_conv_softmax_kernel(x_ref, w_ref, b_ref, o_ref, *, c_in, c_out):
    # x_ref: (1, tT, C_in*K)      time-major patch tile (lane order = k*C_in + i)
    # w_ref: (C_in*C_out, C_in*K) block-diagonal stack of per-channel conv weights
    # b_ref: (C_in*C_out, 1)      stacked biases (f32)
    # o_ref: (1, C_in*C_out, tT)
    x = x_ref[0]                                       # (tT, C_in*K)
    # w @ x.T on the MXU: contraction on both last dims -> in-kernel flip (no
    # wrapper HBM transpose); result is lane-dense in time, f32 accumulate.
    y = lax.dot_general(
        w_ref[...], x,
        dimension_numbers=(((1,), (1,)), ((), ())),
        preferred_element_type=jnp.float32)            # (C_in*C_out, tT)
    y = y + b_ref[...]                                 # one broadcast add, all channels
    tt = y.shape[-1]

    # Softmax across the separate input channels (PyTorch dim=1 of (B, C_in, C_out, T)),
    # computed on a stacked (C_in, C_out, tT) view -> per-lane VPU reduction over axis 0.
    y3 = y.reshape(c_in, c_out, tt)
    m = jnp.max(y3, axis=0, keepdims=True)
    e = jnp.exp(y3 - m)
    denom = jnp.sum(e, axis=0, keepdims=True)
    inv = pl.reciprocal(denom, approx=True)            # EUP slot (~free next to VPU work)
    inv = inv * (2.0 - denom * inv)                    # one Newton step -> ~f32 accuracy

    # Single contiguous, lane/sublane-dense store of the whole tile.
    o_ref[0] = (e * inv).reshape(c_in * c_out, tt).astype(o_ref.dtype)


@functools.partial(jax.jit, static_argnames=("kernel_size",))
def sep_channels_1d_conv(x, weights, bias, kernel_size):
    """x: (B, L, C_in); weights: (C_in, C_out, K); bias: (C_in, C_out) -> (B, C_in*C_out, T)."""
    B, L, C_in = x.shape
    w_cin, C_out, K = weights.shape
    assert w_cin == C_in and K == kernel_size
    T = L // K
    assert T >= 1
    # Block-diagonal trick is a single padded MXU pass only while contraction <= 128.
    # TODO(synk): for C_in*K > 128 switch to a grouped/batched contraction instead.
    assert C_in * K <= 128, "block-diagonal weight path assumes C_in*K <= 128"

    if L != T * K:
        # TODO(synk): ragged-tail slice costs one extra HBM pass over x; avoidable with
        # an L-indexed BlockSpec + in-kernel (tT*K, C_in)->(tT, K*C_in) reshape, at the
        # cost of a lane-sparse VMEM x buffer.
        x = x[:, : T * K, :]
    # Free view (adjacent-dim merge, no data movement): lane index = k*C_in + i.
    xv = x.reshape(B, T, K * C_in)

    # Block-diagonal weight, column order matched to xv's lane order (k*C_in + i).
    eye = jnp.eye(C_in, dtype=weights.dtype)
    w_bd = (weights[:, :, :, None] * eye[:, None, None, :]).reshape(C_in * C_out, K * C_in)
    w_bd = w_bd.astype(x.dtype)                        # bf16 x -> bf16 weights (MXU native)
    b2 = bias.reshape(C_in * C_out, 1).astype(jnp.float32)

    # Lane-dense time tile: fixed 512 (~85% of HBM roofline); cdiv grid with masked
    # partial last block, so no divisor constraint on T.  For T < 512 the full-extent
    # block is tiny and fits every generation's VMEM (incl. v7x's 64 MiB).
    tT = 512 if T >= 512 else T
    nT = pl.cdiv(T, tT)

    kernel = functools.partial(_sep_conv_softmax_kernel, c_in=C_in, c_out=C_out)

    return pl.pallas_call(
        kernel,
        out_shape=jax.ShapeDtypeStruct((B, C_in * C_out, T), x.dtype),
        grid_spec=pltpu.PrefetchScalarGridSpec(
            num_scalar_prefetch=0,
            grid=(B, nT),
            in_specs=[
                pl.BlockSpec((1, tT, K * C_in), lambda b, t: (b, t, 0)),
                pl.BlockSpec((C_in * C_out, K * C_in), lambda b, t: (0, 0)),
                pl.BlockSpec((C_in * C_out, 1), lambda b, t: (0, 0)),
            ],
            out_specs=pl.BlockSpec((1, C_in * C_out, tT), lambda b, t: (b, 0, t)),
        ),
        compiler_params=pltpu.CompilerParams(
            dimension_semantics=("parallel", "parallel"),  # both TCs get work on v7x
            vmem_limit_bytes=32 * 1024 * 1024,
        ),
    )(xv, w_bd, b2)


def _reference(x, weights, bias, K):
    B, L, C_in = x.shape
    _, C_out, _ = weights.shape
    T = L // K
    x = x[:, : T * K, :].astype(jnp.float32)
    xp = jnp.transpose(x, (0, 2, 1)).reshape(B, C_in, T, K)
    y = jnp.einsum("bitk,iok->biot", xp, weights) + bias[None, :, :, None]
    s = jax.nn.softmax(y, axis=1)
    return s.reshape(B, C_in * C_out, T)


if __name__ == "__main__":
    C_in, C_out, K = 4, 8, 4      # conv_in_channels, conv_out_channels, kernel_size

    key = jax.random.PRNGKey(0)
    kx, kw, kb, kx2 = jax.random.split(key, 4)

    # Deterministic Conv1d-style init: U(+-sqrt(1/(in_ch*K))), in_ch = 1
    bound = 1.0 / (1.0 * K) ** 0.5
    weights = jax.random.uniform(kw, (C_in, C_out, K), jnp.float32, -bound, bound)
    bias = jax.random.uniform(kb, (C_in, C_out), jnp.float32, -bound, bound)

    # 1) f32, T a multiple of the 512 time tile (B=2, L=4096 -> T=1024, grid (2,2))
    x = jax.random.normal(kx, (2, 4096, C_in), dtype=jnp.float32)
    out = jax.block_until_ready(sep_channels_1d_conv(x, weights, bias, K))
    ref = _reference(x, weights, bias, K)
    assert out.shape == ref.shape == (2, C_in * C_out, 1024), out.shape
    assert jnp.allclose(out, ref, rtol=1e-4, atol=1e-5), \
        f"f32 mismatch, max abs err {float(jnp.max(jnp.abs(out - ref)))}"

    # 2) ragged: L % K != 0 and T % tT != 0 (masked partial last time block)
    xr = jax.random.normal(kx2, (2, 2803, C_in), dtype=jnp.float32)   # T = 700
    outr = jax.block_until_ready(sep_channels_1d_conv(xr, weights, bias, K))
    refr = _reference(xr, weights, bias, K)
    assert outr.shape == refr.shape == (2, C_in * C_out, 700), outr.shape
    assert jnp.allclose(outr, refr, rtol=1e-4, atol=1e-5), \
        f"ragged mismatch, max abs err {float(jnp.max(jnp.abs(outr - refr)))}"

    # 3) bf16 I/O path (halves HBM traffic on v6e/v7x; softmax math stays f32 in-kernel)
    outb = jax.block_until_ready(
        sep_channels_1d_conv(x.astype(jnp.bfloat16), weights, bias, K))
    assert outb.dtype == jnp.bfloat16
    errb = float(jnp.max(jnp.abs(outb.astype(jnp.float32) - ref)))
    assert jnp.allclose(outb.astype(jnp.float32), ref, rtol=3e-2, atol=3e-2), \
        f"bf16 mismatch, max abs err {errb}"

    print("KERNEL_OK")
</pallas_src>

<mosaic_0001>
module attributes {stable_mosaic.version = 11 : i64} {
  func.func @_sep_conv_softmax_kernel(%arg0: i32, %arg1: i32, %arg2: memref<1x512x16xf32, #tpu.memory_space<vmem>>, %arg3: memref<32x16xf32, #tpu.memory_space<vmem>>, %arg4: memref<32x1xf32, #tpu.memory_space<vmem>>, %arg5: memref<1x32x512xf32, #tpu.memory_space<vmem>>) attributes {dimension_semantics = [#tpu.dimension_semantics<parallel>, #tpu.dimension_semantics<parallel>], iteration_bounds = array<i64: 2, 2>, scalar_prefetch = 0 : i64, scratch_operands = 0 : i64, tpu.core_type = #tpu.core_type<tc>, window_params = [{transform_indices = @transform_0, window_bounds = array<i64: 1, 512, 16>}, {pipeline_mode = #tpu.pipeline_mode<synchronous>, transform_indices = @transform_1, window_bounds = array<i64: 32, 16>}, {pipeline_mode = #tpu.pipeline_mode<synchronous>, transform_indices = @transform_2, window_bounds = array<i64: 32, 1>}, {transform_indices = @transform_3, window_bounds = array<i64: 1, 32, 512>}]} {
    %c0 = arith.constant 0 : index
    %c0_0 = arith.constant 0 : index
    %c0_1 = arith.constant 0 : index
    %0 = vector.load %arg2[%c0, %c0_0, %c0_1] : memref<1x512x16xf32, #tpu.memory_space<vmem>>, vector<1x512x16xf32>
    %1 = vector.shape_cast %0 : vector<1x512x16xf32> to vector<512x16xf32>
    %c0_2 = arith.constant 0 : index
    %c0_3 = arith.constant 0 : index
    %2 = vector.load %arg3[%c0_2, %c0_3] : memref<32x16xf32, #tpu.memory_space<vmem>>, vector<32x16xf32>
    %cst = arith.constant dense<0.000000e+00> : vector<32x512xf32>
    %3 = tpu.matmul %2, %1, %cst {dimension_numbers = #tpu.dot_dimension_numbers<[1], [1], [0], [0], [0, 0, 1, 0], [], []>} : vector<32x16xf32>, vector<512x16xf32>, vector<32x512xf32> -> vector<32x512xf32>
    %c0_4 = arith.constant 0 : index
    %c0_5 = arith.constant 0 : index
    %4 = vector.load %arg4[%c0_4, %c0_5] : memref<32x1xf32, #tpu.memory_space<vmem>>, vector<32x1xf32>
    %5 = vector.broadcast %4 : vector<32x1xf32> to vector<32x512xf32>
    %6 = arith.addf %3, %5 : vector<32x512xf32>
    %7 = vector.shape_cast %6 : vector<32x512xf32> to vector<4x8x512xf32>
    %cst_6 = arith.constant dense<0xFF800000> : vector<8x512xf32>
    %8 = vector.multi_reduction <maximumf>, %7, %cst_6 [0] : vector<4x8x512xf32> to vector<8x512xf32>
    %9 = vector.shape_cast %8 : vector<8x512xf32> to vector<1x8x512xf32>
    %10 = vector.broadcast %9 : vector<1x8x512xf32> to vector<4x8x512xf32>
    %11 = arith.subf %7, %10 : vector<4x8x512xf32>
    %12 = math.exp %11 : vector<4x8x512xf32>
    %cst_7 = arith.constant dense<0.000000e+00> : vector<8x512xf32>
    %13 = vector.multi_reduction <add>, %12, %cst_7 [0] : vector<4x8x512xf32> to vector<8x512xf32>
    %14 = vector.shape_cast %13 : vector<8x512xf32> to vector<1x8x512xf32>
    %15 = tpu.reciprocal %14 {approx = true} : vector<1x8x512xf32> -> vector<1x8x512xf32>
    %16 = arith.mulf %14, %15 : vector<1x8x512xf32>
    %cst_8 = arith.constant 2.000000e+00 : f32
    %17 = vector.broadcast %cst_8 : f32 to vector<1x8x512xf32>
    %18 = arith.subf %17, %16 : vector<1x8x512xf32>
    %19 = arith.mulf %15, %18 : vector<1x8x512xf32>
    %20 = vector.broadcast %19 : vector<1x8x512xf32> to vector<4x8x512xf32>
    %21 = arith.mulf %12, %20 : vector<4x8x512xf32>
    %22 = vector.shape_cast %21 : vector<4x8x512xf32> to vector<32x512xf32>
    %c0_9 = arith.constant 0 : index
    %c0_10 = arith.constant 0 : index
    %c0_11 = arith.constant 0 : index
    %23 = vector.load %arg5[%c0_9, %c0_10, %c0_11] : memref<1x32x512xf32, #tpu.memory_space<vmem>>, vector<1x32x512xf32>
    %24 = vector.shape_cast %23 : vector<1x32x512xf32> to vector<32x512xf32>
    %25 = vector.shape_cast %22 : vector<32x512xf32> to vector<1x32x512xf32>
    tpu.vector_store %arg5[%c0_9, %c0_10, %c0_11], %25 {strides = array<i32>} : memref<1x32x512xf32, #tpu.memory_space<vmem>>, vector<1x32x512xf32>,
    return
  }
  func.func @transform_0(%arg0: i32, %arg1: i32) -> (i32, i32, i32) {
    %c0_i32 = arith.constant 0 : i32
    %c0_i32_0 = arith.constant 0 : i32
    return %arg0, %arg1, %c0_i32 : i32, i32, i32
  }
  func.func @transform_1(%arg0: i32, %arg1: i32) -> (i32, i32) {
    %c0_i32 = arith.constant 0 : i32
    %c0_i32_0 = arith.constant 0 : i32
    %c0_i32_1 = arith.constant 0 : i32
    return %c0_i32, %c0_i32_0 : i32, i32
  }
  func.func @transform_2(%arg0: i32, %arg1: i32) -> (i32, i32) {
    %c0_i32 = arith.constant 0 : i32
    %c0_i32_0 = arith.constant 0 : i32
    %c0_i32_1 = arith.constant 0 : i32
    return %c0_i32, %c0_i32_0 : i32, i32
  }
  func.func @transform_3(%arg0: i32, %arg1: i32) -> (i32, i32, i32) {
    %c0_i32 = arith.constant 0 : i32
    %c0_i32_0 = arith.constant 0 : i32
    return %arg0, %c0_i32, %arg1 : i32, i32, i32
  }
}

</mosaic_0001>

<bundles_post_ra>
// kernel: sep_channels_1d_conv.1
= control target key start
LH: loop header
LB: loop body
LE: loop exit
PB: predicated region body
PF: predicated region fallthrough
CT: control target
= control target key end

     0   :  { %8 = vsyncpa [#allocation3], 0  ;;  %s1479_s0 = inlined_call_operand.vmem [shape: f32[2,1024,16], index: 0, kind: input, shape index: {}]   ;;  %s1480_s1 = inlined_call_operand.vmem [shape: f32[32,16], index: 1, kind: input, shape index: {}]   ;;  %s1481_s2 = inlined_call_operand.vmem [shape: f32[32,1], index: 2, kind: input, shape index: {}]   ;;  %s1482_s3 = inlined_call_operand.hbm [shape: f32[2,32,1024], index: 3, kind: output, shape index: {}]  }
   0x1   :  { %10 = vsyncpa [#allocation3 + $0x1], 0  ;;  %s1165_s12 = smov 0   ;;  %s1167_s13 = smov 0  }
   0x2   :  { %s1169_s14 = smov 0   ;;  %s1171_s15 = smov 0  }
   0x3   :  { %s1173_s16 = smov 0   ;;  %s1175_s17 = smov 0  }
   0x4   :  { %s1177_s18 = smov 0   ;;  %s1179_s19 = smov 0  }
   0x5 LB: > { %s833_s20 = sadd.s32 4294967295, %s1139_s19   ;;  %s834_s21 = sadd.s32 4294967294, %s1139_s19   ;;  %s1139_s19 = sphi %s1179_s19, %s16_s19   ;;  %s1135_s18 = sphi %s1177_s18, %s1491_s18   ;;  %s1131_s17 = sphi %s1175_s17, %s1490_s17   ;;  %s1127_s16 = sphi %s1173_s16, %s1489_s16   ;;  %s1123_s15 = sphi %s1171_s15, %s1488_s15   ;;  %s1119_s14 = sphi %s1169_s14, %s1487_s14   ;;  %s1115_s13 = sphi %s1167_s13, %s1486_s13   ;;  %s1111_s12 = sphi %s1165_s12, %s1485_s12  }
   0x6   : > { %s25_s22 = sadd.s32 1, %s1131_s17  ;;  %s28_s23 = sadd.s32 1, %s1135_s18 }
   0x7   : > { %p26_p0 = scmp.ge.s32.totalorder %s25_s22, 2  ;;  %p117_p1 = scmp.ne.s32.totalorder %s1119_s14, %s1115_s13 }
   0x8   : > { %p118_p2 = scmp.eq.s32.totalorder %s833_s20, 3  ;;  %p123_p5 = scmp.ne.s32.totalorder %s1115_s13, %s1111_s12 }
   0x9   : > { %s1493_s22 = smov (%p26_p0, %s25_s22), 0  ;;  %s1495_s23 = smov (!%p26_p0, %s28_s23), %s1135_s18 }
   0xa   : > { %s103_s24 = ssub.s32 %s1131_s17, %s1493_s22  ;;  %p1216_p3 = por %p118_p2, %p117_p1 }
   0xb   : > { %p30_p4 = scmp.ge.s32.totalorder %s1495_s23, 2  ;;  %p124_p6 = scmp.eq.s32.totalorder %s834_s21, 3 }
   0xc   : > { %p837_p7 = scmp.ge.s32.totalorder %s1139_s19, 1  ;;  %p161_p9 = scmp.lt.s32.totalorder %s1139_s19, 5 }
   0xd   : > { %s1497_s23 = smov (%p30_p4, %s1495_s23), 0  ;;  %p1225_p8 = por %p124_p6, %p123_p5 }
   0xe   : > { %s102_s27 = ssub.s32 %s1135_s18, %s1497_s23  ;;  %s107_s28 = sadd.s32 1, %s1119_s14 }
   0xf   : > { %s104_s29 = sor.u32 %s103_s24, %s102_s27  ;;  %p162_p10 = pnand %p837_p7, %p161_p9 }
  0x10   : > { %p105_p11 = scmp.eq.s32.totalorder %s104_s29, 0  ;;  %s839_s4 = sshll.u32 (!%p162_p10), %s1123_s15, 6 }
  0x11   : > { %165 = sbr.rel (%p162_p10) target bundleno = 300 (0x12c), region = 32  ;;  %p190_p12 = scmp.lt.s32.totalorder (!%p162_p10), %s1127_s16, 1 }
  0x12   : > { %s1234_s30 = scalar_select %p105_p11, %s1119_s14, %s107_s28  }
  0x13   : > { %p192_p13 = scmp.lt.s32.totalorder (!%p162_p10), %s839_s4, 127  ;;  %s186_s24 = sand.u32 (!%p162_p10), 1, %s1115_s13  }
  0x14   : > { %s838_s27 = sshll.u32 (!%p162_p10), %s186_s24, 7  ;;  %s923_s28 = sshll.u32 (!%p162_p10), %s1123_s15, 2 }
  0x15   : > { %s924_s29 = sshll.u32 (!%p162_p10), %s1127_s16, 5  ;;  %s734_s10 = scalar_lea.sflag (!%p162_p10), [#allocation3], %s186_s24 }
  0x16   : > { %s191_s5 = scalar_select %p190_p12, %s1127_s16, 1  ;;  %vm292_vm0 = vcmask 130048   ;;  %v268_v44 = vld [vmem:[%s1481_s2] sm:$0xff]  ;;  %v1141_v49 = vmov 0   ;;  %v269_v54 = vld [vmem:[%s1481_s2 + $0x8] sm:$0xff]  ;;  %v270_v63 = vld [vmem:[%s1481_s2 + $0x10] sm:$0xff] }
  0x17   : > { %s1499_s4 = smov (!%p192_p13, %s839_s4), 127  ;;  %1003 = vset.pattern.permute.xlu0 %v1141_v49  ;;  %1004 = vset.pattern.permute.xlu1 %v1141_v49 }
  0x18   : > { %s840_s6 = sshll.u32 %s191_s5, 7  ;;  %274 = vperm.xlu0 %1003, %v268_v44   ;;  %284 = vperm.xlu1 %1004, %v270_v63   ;;  %s745_s5 = sadd.s32 %s924_s29, %s923_s28 }
  0x19   : > { %s195_s7 = sadd.s32 %s840_s6, %s1499_s4  ;;  %s1417_s4 = scalar_lea.vmem [#allocation2], %s838_s27 }
  0x1a   : > { %s841_s8 = sshll.u32 %s195_s7, 3  ;;  %s925_s15 = sshll.u32 %s745_s5, 3 }
  0x1b   : > { %s1242_s11 = scalar_lea.vmem %s1479_s0, %s841_s8  ;;  %s747_s7 = scalar_lea.hbm %s1482_s3, %s925_s15 }
  0x1c   : > { %v215_v0 = vld [vmem:[%s1242_s11 + $0x78] sm:$0xff]  ;;  %v214_v4 = vld [vmem:[%s1242_s11 + $0x70] sm:$0xff]  ;;  %v213_v8 = vld [vmem:[%s1242_s11 + $0x68] sm:$0xff]  ;;  %s748_s8 = sshll.u32 %s1417_s4, 4  ;;  %s750_s9 = sshll.u32 %s747_s7, 4  ;;  %s749_s8 = int_to_ptr.vmem [resolvable:$true] %s748_s8  ;;  %s751_s9 = int_to_ptr.hbm [resolvable:$true] %s750_s9 }
  0x1d   : > { %v231_v1 = vld [vmem:[%s1242_s11 + $0xf8] sm:$0xff]  ;;  %842 = vmatpush.xpose.msk.msra.mxu0 %vm292_vm0, %v215_v0  ;;  %v230_v5 = vld [vmem:[%s1242_s11 + $0xf0] sm:$0xff]  ;;  %v229_v9 = vld [vmem:[%s1242_s11 + $0xe8] sm:$0xff]  ;;  %s1065_s28 = scalar_lea.hbm %s1482_s3, 512 }
  0x1e   : > { %v247_v2 = vld [vmem:[%s1242_s11 + $0x178] sm:$0xff]  ;;  %862 = vmatpush.xpose.msk.msra.mxu1 %vm292_vm0, %v231_v1  ;;  %v246_v6 = vld [vmem:[%s1242_s11 + $0x170] sm:$0xff]  ;;  %v245_v10 = vld [vmem:[%s1242_s11 + $0x168] sm:$0xff] }
  0x1f   : > { %v263_v3 = vld [vmem:[%s1242_s11 + $0x1f8] sm:$0xff]  ;;  %882 = vmatpush.xpose.msk.msra.mxu2 %vm292_vm0, %v247_v2  ;;  %v262_v7 = vld [vmem:[%s1242_s11 + $0x1f0] sm:$0xff]  ;;  %v261_v11 = vld [vmem:[%s1242_s11 + $0x1e8] sm:$0xff] }
  0x20   : > { %902 = vmatpush.xpose.msk.msra.mxu3 %vm292_vm0, %v263_v3  ;;  %v212_v12 = vld [vmem:[%s1242_s11 + $0x60] sm:$0xff]  ;;  %v211_v16 = vld [vmem:[%s1242_s11 + $0x58] sm:$0xff]  ;;  %v210_v20 = vld [vmem:[%s1242_s11 + $0x50] sm:$0xff]  ;;  %279 = vperm.xlu0 %1003, %v269_v54  }
  0x21   : > { %843 = vmatpush.xpose.msk.msra.mxu0 %vm292_vm0, %v214_v4  ;;  %v228_v13 = vld [vmem:[%s1242_s11 + $0xe0] sm:$0xff]  ;;  %v227_v17 = vld [vmem:[%s1242_s11 + $0xd8] sm:$0xff]  ;;  %v226_v21 = vld [vmem:[%s1242_s11 + $0xd0] sm:$0xff] }
  0x22   : > { %863 = vmatpush.xpose.msk.msra.mxu1 %vm292_vm0, %v230_v5  ;;  %v244_v14 = vld [vmem:[%s1242_s11 + $0x160] sm:$0xff]  ;;  %v243_v18 = vld [vmem:[%s1242_s11 + $0x158] sm:$0xff]  ;;  %v242_v22 = vld [vmem:[%s1242_s11 + $0x150] sm:$0xff] }
  0x23   : > { %883 = vmatpush.xpose.msk.msra.mxu2 %vm292_vm0, %v246_v6  ;;  %v260_v15 = vld [vmem:[%s1242_s11 + $0x1e0] sm:$0xff]  ;;  %v259_v19 = vld [vmem:[%s1242_s11 + $0x1d8] sm:$0xff]  ;;  %v258_v23 = vld [vmem:[%s1242_s11 + $0x1d0] sm:$0xff] }
  0x24   : > { %903 = vmatpush.xpose.msk.msra.mxu3 %vm292_vm0, %v262_v7  ;;  %v209_v24 = vld [vmem:[%s1242_s11 + $0x48] sm:$0xff]  ;;  %v208_v28 = vld [vmem:[%s1242_s11 + $0x40] sm:$0xff]  ;;  %v207_v32 = vld [vmem:[%s1242_s11 + $0x38] sm:$0xff] }
  0x25   : > { %844 = vmatpush.xpose.msk.msra.mxu0 %vm292_vm0, %v213_v8  ;;  %v225_v25 = vld [vmem:[%s1242_s11 + $0xc8] sm:$0xff]  ;;  %v224_v29 = vld [vmem:[%s1242_s11 + $0xc0] sm:$0xff]  ;;  %v223_v33 = vld [vmem:[%s1242_s11 + $0xb8] sm:$0xff] }
  0x26   : > { %864 = vmatpush.xpose.msk.msra.mxu1 %vm292_vm0, %v229_v9  ;;  %v241_v26 = vld [vmem:[%s1242_s11 + $0x148] sm:$0xff]  ;;  %v240_v30 = vld [vmem:[%s1242_s11 + $0x140] sm:$0xff]  ;;  %v239_v34 = vld [vmem:[%s1242_s11 + $0x138] sm:$0xff] }
  0x27   : > { %884 = vmatpush.xpose.msk.msra.mxu2 %vm292_vm0, %v245_v10  ;;  %v257_v27 = vld [vmem:[%s1242_s11 + $0x1c8] sm:$0xff]  ;;  %v256_v31 = vld [vmem:[%s1242_s11 + $0x1c0] sm:$0xff]  ;;  %v255_v35 = vld [vmem:[%s1242_s11 + $0x1b8] sm:$0xff] }
  0x28   : > { %904 = vmatpush.xpose.msk.msra.mxu3 %vm292_vm0, %v261_v11  ;;  %v206_v36 = vld [vmem:[%s1242_s11 + $0x30] sm:$0xff]  ;;  %v205_v40 = vld [vmem:[%s1242_s11 + $0x28] sm:$0xff]  ;;  %v204_v45 = vld [vmem:[%s1242_s11 + $0x20] sm:$0xff] }
  0x29   : > { %845 = vmatpush.xpose.msk.msra.mxu0 %vm292_vm0, %v212_v12  ;;  %v222_v37 = vld [vmem:[%s1242_s11 + $0xb0] sm:$0xff]  ;;  %v221_v41 = vld [vmem:[%s1242_s11 + $0xa8] sm:$0xff]  ;;  %v220_v46 = vld [vmem:[%s1242_s11 + $0xa0] sm:$0xff] }
  0x2a   : > { %865 = vmatpush.xpose.msk.msra.mxu1 %vm292_vm0, %v228_v13  ;;  %v238_v38 = vld [vmem:[%s1242_s11 + $0x130] sm:$0xff]  ;;  %v237_v42 = vld [vmem:[%s1242_s11 + $0x128] sm:$0xff]  ;;  %v236_v47 = vld [vmem:[%s1242_s11 + $0x120] sm:$0xff] }
  0x2b   : > { %885 = vmatpush.xpose.msk.msra.mxu2 %vm292_vm0, %v244_v14  ;;  %v254_v39 = vld [vmem:[%s1242_s11 + $0x1b0] sm:$0xff]  ;;  %v253_v43 = vld [vmem:[%s1242_s11 + $0x1a8] sm:$0xff]  ;;  %v252_v48 = vld [vmem:[%s1242_s11 + $0x1a0] sm:$0xff] }
  0x2c   : > { %905 = vmatpush.xpose.msk.msra.mxu3 %vm292_vm0, %v260_v15  ;;  %v203_v50 = vld [vmem:[%s1242_s11 + $0x18] sm:$0xff]  ;;  %v202_v55 = vld [vmem:[%s1242_s11 + $0x10] sm:$0xff]  ;;  %v201_v59 = vld [vmem:[%s1242_s11 + $0x8] sm:$0xff] }
  0x2d   : > { %846 = vmatpush.xpose.msk.msra.mxu0 %vm292_vm0, %v211_v16  ;;  %v219_v51 = vld [vmem:[%s1242_s11 + $0x98] sm:$0xff]  ;;  %v218_v56 = vld [vmem:[%s1242_s11 + $0x90] sm:$0xff]  ;;  %v217_v60 = vld [vmem:[%s1242_s11 + $0x88] sm:$0xff] }
  0x2e   : > { %866 = vmatpush.xpose.msk.msra.mxu1 %vm292_vm0, %v227_v17  ;;  %v235_v52 = vld [vmem:[%s1242_s11 + $0x118] sm:$0xff]  ;;  %v234_v57 = vld [vmem:[%s1242_s11 + $0x110] sm:$0xff]  ;;  %v233_v61 = vld [vmem:[%s1242_s11 + $0x108] sm:$0xff] }
  0x2f   : > { %886 = vmatpush.xpose.msk.msra.mxu2 %vm292_vm0, %v243_v18  ;;  %v251_v53 = vld [vmem:[%s1242_s11 + $0x198] sm:$0xff]  ;;  %v250_v58 = vld [vmem:[%s1242_s11 + $0x190] sm:$0xff]  ;;  %v249_v62 = vld [vmem:[%s1242_s11 + $0x188] sm:$0xff] }
  0x30   : > { %906 = vmatpush.xpose.msk.msra.mxu3 %vm292_vm0, %v259_v19  ;;  %v200_v0 = vld [vmem:[%s1242_s11] sm:$0xff]  ;;  %v271_v5 = vld [vmem:[%s1481_s2 + $0x18] sm:$0xff]  ;;  %v265_v6 = vld [vmem:[%s1480_s1 + $0x8] sm:$0xff] }
  0x31   : > { %847 = vmatpush.xpose.msk.msra.mxu0 %vm292_vm0, %v210_v20  ;;  %v216_v1 = vld [vmem:[%s1242_s11 + $0x80] sm:$0xff]  ;;  %289 = vperm.xlu1 %1004, %v271_v5   ;;  %v266_v7 = vld [vmem:[%s1480_s1 + $0x10] sm:$0xff]  ;;  %v267_v8 = vld [vmem:[%s1480_s1 + $0x18] sm:$0xff] }
  0x32   : > { %867 = vmatpush.xpose.msk.msra.mxu1 %vm292_vm0, %v226_v21  ;;  %v232_v2 = vld [vmem:[%s1242_s11 + $0x100] sm:$0xff] }
  0x33   : > { %887 = vmatpush.xpose.msk.msra.mxu2 %vm292_vm0, %v242_v22  ;;  %v248_v3 = vld [vmem:[%s1242_s11 + $0x180] sm:$0xff]  ;;  %s1059_s11 = sshra.s32 %s751_s9, 4  ;;  %s1060_s11 = int_to_ptr.hbm [resolvable:$true] %s1059_s11 }
  0x34   : > { %907 = vmatpush.xpose.msk.msra.mxu3 %vm292_vm0, %v258_v23  ;;  %v264_v4 = vld [vmem:[%s1480_s1] sm:$0xff]  ;;  %s1061_s20 = scalar_lea.hbm %s1060_s11, 128  ;;  %p1066_p4 = scmp.lt.s32.totalorder %s1060_s11, %s1482_s3 }
  0x35   : > { %848 = vmatpush.xpose.msk.msra.mxu0 %vm292_vm0, %v209_v24  ;;  %p1062_p0 = scmp.ne.s32.totalorder %s1060_s11, %s1061_s20  ;;  %p1067_p5 = scmp.lt.s32.totalorder %s1065_s28, %s1061_s20 }
  0x36   : > { %868 = vmatpush.xpose.msk.msra.mxu1 %vm292_vm0, %v225_v25 }
  0x37   : > { %888 = vmatpush.xpose.msk.msra.mxu2 %vm292_vm0, %v241_v26  ;;  %p1063_p1 = pnand %p1062_p0, %p1216_p3  ;;  %p1068_p6 = por %p1067_p5, %p1066_p4 }
  0x38   : > { %908 = vmatpush.xpose.msk.msra.mxu3 %vm292_vm0, %v257_v27 }
  0x39   : > { %849 = vmatpush.xpose.msk.msra.mxu0 %vm292_vm0, %v208_v28  ;;  %p1064_p2 = pneg %p1063_p1 }
  0x3a   : > { %869 = vmatpush.xpose.msk.msra.mxu1 %vm292_vm0, %v224_v29 }
  0x3b   : > { %889 = vmatpush.xpose.msk.msra.mxu2 %vm292_vm0, %v240_v30  ;;  %p1069_p7 = pnand %p1068_p6, %p1064_p2 }
  0x3c   : > { %909 = vmatpush.xpose.msk.msra.mxu3 %vm292_vm0, %v256_v31 }
  0x3d   : > { %850 = vmatpush.xpose.msk.msra.mxu0 %vm292_vm0, %v207_v32 }
  0x3e   : > { %870 = vmatpush.xpose.msk.msra.mxu1 %vm292_vm0, %v223_v33 }
  0x3f   : > { %890 = vmatpush.xpose.msk.msra.mxu2 %vm292_vm0, %v239_v34 }
  0x40   : > { %910 = vmatpush.xpose.msk.msra.mxu3 %vm292_vm0, %v255_v35 }
  0x41   : > { %851 = vmatpush.xpose.msk.msra.mxu0 %vm292_vm0, %v206_v36 }
  0x42   : > { %871 = vmatpush.xpose.msk.msra.mxu1 %vm292_vm0, %v222_v37 }
  0x43   : > { %891 = vmatpush.xpose.msk.msra.mxu2 %vm292_vm0, %v238_v38 }
  0x44   : > { %911 = vmatpush.xpose.msk.msra.mxu3 %vm292_vm0, %v254_v39 }
  0x45   : > { %852 = vmatpush.xpose.msk.msra.mxu0 %vm292_vm0, %v205_v40 }
  0x46   : > { %872 = vmatpush.xpose.msk.msra.mxu1 %vm292_vm0, %v221_v41 }
  0x47   : > { %892 = vmatpush.xpose.msk.msra.mxu2 %vm292_vm0, %v237_v42 }
  0x48   : > { %912 = vmatpush.xpose.msk.msra.mxu3 %vm292_vm0, %v253_v43 }
  0x49   : > { %853 = vmatpush.xpose.msk.msra.mxu0 %vm292_vm0, %v204_v45 }
  0x4a   : > { %873 = vmatpush.xpose.msk.msra.mxu1 %vm292_vm0, %v220_v46 }
  0x4b   : > { %893 = vmatpush.xpose.msk.msra.mxu2 %vm292_vm0, %v236_v47 }
  0x4c   : > { %913 = vmatpush.xpose.msk.msra.mxu3 %vm292_vm0, %v252_v48 }
  0x4d   : > { %854 = vmatpush.xpose.msk.msra.mxu0 %vm292_vm0, %v203_v50 }
  0x4e   : > { %874 = vmatpush.xpose.msk.msra.mxu1 %vm292_vm0, %v219_v51 }
  0x4f   : > { %894 = vmatpush.xpose.msk.msra.mxu2 %vm292_vm0, %v235_v52 }
  0x50   : > { %914 = vmatpush.xpose.msk.msra.mxu3 %vm292_vm0, %v251_v53 }
  0x51   : > { %855 = vmatpush.xpose.msk.msra.mxu0 %vm292_vm0, %v202_v55 }
  0x52   : > { %875 = vmatpush.xpose.msk.msra.mxu1 %vm292_vm0, %v218_v56 }
  0x53   : > { %895 = vmatpush.xpose.msk.msra.mxu2 %vm292_vm0, %v234_v57 }
  0x54   : > { %915 = vmatpush.xpose.msk.msra.mxu3 %vm292_vm0, %v250_v58 }
  0x55   : > { %856 = vmatpush.xpose.msk.msra.mxu0 %vm292_vm0, %v201_v59 }
  0x56   : > { %876 = vmatpush.xpose.msk.msra.mxu1 %vm292_vm0, %v217_v60 }
  0x57   : > { %896 = vmatpush.xpose.msk.msra.mxu2 %vm292_vm0, %v233_v61 }
  0x58   : > { %916 = vmatpush.xpose.msk.msra.mxu3 %vm292_vm0, %v249_v62 }
  0x59   : > { %857 = vmatpush.xpose.msk.msra.mxu0 %vm292_vm0, %v200_v0 }
  0x5a   : > { %877 = vmatpush.xpose.msk.msra.mxu1 %vm292_vm0, %v216_v1 }
  0x5b   : > { %897 = vmatpush.xpose.msk.msra.mxu2 %vm292_vm0, %v232_v2 }
  0x5c   : > { %917 = vmatpush.xpose.msk.msra.mxu3 %vm292_vm0, %v248_v3  ;;  %858 = vmatmul.msk.f32.vlgmr.msra.gmra.mxu0 %vm292_vm0, %v264_v4 }
  0x5d   : > { %878 = vmatmul.msk.f32.vlgmr.msra.gmra.mxu1 %vm292_vm0, %v264_v4 }
  0x5e   : > { %898 = vmatmul.msk.f32.vlgmr.msra.gmra.mxu2 %vm292_vm0, %v264_v4 }
  0x5f   : > { %918 = vmatmul.msk.f32.vlgmr.msra.gmra.mxu3 %vm292_vm0, %v264_v4 }
  0x64   : > { %859 = vmatmul.msk.f32.gmra.mxu0 %vm292_vm0, %v265_v6 }
  0x65   : > { %879 = vmatmul.msk.f32.gmra.mxu1 %vm292_vm0, %v265_v6 }
  0x66   : > { %899 = vmatmul.msk.f32.gmra.mxu2 %vm292_vm0, %v265_v6 }
  0x67   : > { %919 = vmatmul.msk.f32.gmra.mxu3 %vm292_vm0, %v265_v6 }
  0x6c   : > { %860 = vmatmul.msk.f32.gmra.mxu0 %vm292_vm0, %v266_v7 }
  0x6d   : > { %880 = vmatmul.msk.f32.gmra.mxu1 %vm292_vm0, %v266_v7 }
  0x6e   : > { %900 = vmatmul.msk.f32.gmra.mxu2 %vm292_vm0, %v266_v7 }
  0x6f   : > { %920 = vmatmul.msk.f32.gmra.mxu3 %vm292_vm0, %v266_v7 }
  0x74   : > { %861 = vmatmul.msk.f32.gmra.mxu0 %vm292_vm0, %v267_v8 }
  0x75   : > { %881 = vmatmul.msk.f32.gmra.mxu1 %vm292_vm0, %v267_v8 }
  0x76   : > { %901 = vmatmul.msk.f32.gmra.mxu2 %vm292_vm0, %v267_v8 }
  0x77   : > { %921 = vmatmul.msk.f32.gmra.mxu3 %vm292_vm0, %v267_v8 }
  0x8a   : > { %v275_v11 = vpop.permute.xlu0 %274  ;;  %v285_v16 = vpop.permute.xlu1 %284 }
  0x92   : > { %v280_v17 = vpop.permute.xlu0 %279 }
  0xa3   : > { %v290_v28 = vpop.permute.xlu1 %289 }
  0xd9   : > { %v514_v9 = vpop.f32.mrf.mxu0 }
  0xda   : > { %v543_v10 = vpop.f32.mrf.mxu1  ;;  %v515_v24 = vadd.f32 %v514_v9, %v275_v11 }
  0xdb   : > { %v544_v25 = vadd.f32 %v543_v10, %v275_v11 }
  0xe1   : > { %v572_v12 = vpop.f32.mrf.mxu2  ;;  %v517_v14 = vpop.f32.mrf.mxu0 }
  0xe2   : > { %v601_v13 = vpop.f32.mrf.mxu3  ;;  %v546_v15 = vpop.f32.mrf.mxu1  ;;  %v518_v22 = vadd.f32 %v517_v14, %v280_v17  ;;  %v573_v40 = vadd.f32 %v572_v12, %v275_v11 }
  0xe3   : > { %v547_v23 = vadd.f32 %v546_v15, %v280_v17  ;;  %v602_v44 = vadd.f32 %v601_v13, %v275_v11 }
  0xe4   : > { %v613_v29 = vmax.f32 %v515_v24, %v518_v22 }
  0xe5   : > { %v616_v30 = vmax.f32 %v544_v25, %v547_v23 }
  0xe9   : > { %v575_v18 = vpop.f32.mrf.mxu2  ;;  %v520_v20 = vpop.f32.mrf.mxu0 }
  0xea   : > { %v604_v19 = vpop.f32.mrf.mxu3  ;;  %v549_v21 = vpop.f32.mrf.mxu1  ;;  %v521_v26 = vadd.f32 %v520_v20, %v285_v16  ;;  %v576_v33 = vadd.f32 %v575_v18, %v280_v17 }
  0xeb   : > { %v550_v27 = vadd.f32 %v549_v21, %v285_v16  ;;  %v605_v41 = vadd.f32 %v604_v19, %v280_v17 }
  0xec   : > { %v614_v36 = vmax.f32 %v613_v29, %v521_v26  ;;  %v619_v45 = vmax.f32 %v573_v40, %v576_v33 }
  0xed   : > { %v617_v37 = vmax.f32 %v616_v30, %v550_v27  ;;  %v622_v52 = vmax.f32 %v602_v44, %v605_v41 }
  0xf1   : > { %v578_v31 = vpop.f32.mrf.mxu2  ;;  %v523_v34 = vpop.f32.mrf.mxu0 }
  0xf2   : > { %v607_v32 = vpop.f32.mrf.mxu3  ;;  %v552_v35 = vpop.f32.mrf.mxu1  ;;  %v524_v38 = vadd.f32 %v523_v34, %v290_v28  ;;  %v579_v46 = vadd.f32 %v578_v31, %v285_v16 }
  0xf3   : > { %v553_v39 = vadd.f32 %v552_v35, %v290_v28  ;;  %v608_v47 = vadd.f32 %v607_v32, %v285_v16 }
  0xf4   : > { %v615_v42 = vmax.f32 %v614_v36, %v524_v38  ;;  %v620_v62 = vmax.f32 %v619_v45, %v579_v46 }
  0xf5   : > { %v618_v43 = vmax.f32 %v617_v37, %v553_v39  ;;  %v623_v1 = vmax.f32 %v622_v52, %v608_v47 }
  0xf6   : > { %v625_v48 = vsub.f32 %v515_v24, %v615_v42  ;;  %v629_v49 = vsub.f32 %v518_v22, %v615_v42  ;;  %v633_v50 = vsub.f32 %v521_v26, %v615_v42  ;;  %v637_v51 = vsub.f32 %v524_v38, %v615_v42 }
  0xf7   : > { %v626_v53 = vsub.f32 %v544_v25, %v618_v43  ;;  %v630_v54 = vsub.f32 %v547_v23, %v618_v43  ;;  %v634_v55 = vsub.f32 %v550_v27, %v618_v43  ;;  %v638_v59 = vsub.f32 %v553_v39, %v618_v43 }
  0xf8   : > { %v641_v56 = vmul.f32 1.442695, %v625_v48  ;;  %v649_v57 = vmul.f32 1.442695, %v629_v49  ;;  %v657_v58 = vmul.f32 1.442695, %v633_v50 }
  0xf9   : > { %v581_v60 = vpop.f32.mrf.mxu2  ;;  %v665_v63 = vmul.f32 1.442695, %v637_v51  ;;  %v643_v2 = vmul.f32 1.442695, %v626_v53  ;;  %v651_v4 = vmul.f32 1.442695, %v630_v54 }
  0xfa   : > { %v610_v61 = vpop.f32.mrf.mxu3  ;;  %v582_v0 = vadd.f32 %v581_v60, %v290_v28  ;;  %1005 = vpow2.f32 %v641_v56  ;;  %v659_v6 = vmul.f32 1.442695, %v634_v55  ;;  %v667_v7 = vmul.f32 1.442695, %v638_v59 }
  0xfb   : > { %v611_v3 = vadd.f32 %v610_v61, %v290_v28  ;;  %1007 = vpow2.f32 %v649_v57 }
  0xfc   : > { %v621_v5 = vmax.f32 %v620_v62, %v582_v0  ;;  %1009 = vpow2.f32 %v657_v58 }
  0xfd   : > { %v624_v8 = vmax.f32 %v623_v1, %v611_v3  ;;  %1011 = vpow2.f32 %v665_v63 }
  0xfe   : > { %v627_v9 = vsub.f32 %v573_v40, %v621_v5  ;;  %v631_v10 = vsub.f32 %v576_v33, %v621_v5  ;;  %v635_v11 = vsub.f32 %v579_v46, %v621_v5  ;;  %1013 = vpow2.f32 %v643_v2 }
  0xff   : > { %v639_v12 = vsub.f32 %v582_v0, %v621_v5  ;;  %v628_v13 = vsub.f32 %v602_v44, %v624_v8  ;;  %1015 = vpow2.f32 %v651_v4  ;;  %v632_v16 = vsub.f32 %v605_v41, %v624_v8 }
 0x100   : > { %v645_v14 = vmul.f32 1.442695, %v627_v9  ;;  %v653_v15 = vmul.f32 1.442695, %v631_v10  ;;  %v1006_v17 = vpop.eup %1005  ;;  %1017 = vpow2.f32 %v659_v6  ;;  %v661_v18 = vmul.f32 1.442695, %v635_v11 }
 0x101   : > { %v1008_v19 = vpop.eup %1007  ;;  %1019 = vpow2.f32 %v667_v7  ;;  %v669_v20 = vmul.f32 1.442695, %v639_v12  ;;  %v636_v21 = vsub.f32 %v608_v47, %v624_v8  ;;  %v647_v24 = vmul.f32 1.442695, %v628_v13 }
 0x102   : > { %v1010_v22 = vpop.eup %1009  ;;  %v673_v23 = vadd.f32 %v1008_v19, %v1006_v17  ;;  %1021 = vpow2.f32 %v645_v14  ;;  %v640_v26 = vsub.f32 %v611_v3, %v624_v8  ;;  %v655_v27 = vmul.f32 1.442695, %v632_v16 }
 0x103   : > { %v1012_v25 = vpop.eup %1011  ;;  %1023 = vpow2.f32 %v653_v15  ;;  %v663_v31 = vmul.f32 1.442695, %v636_v21 }
 0x104   : > { %v1014_v28 = vpop.eup %1013  ;;  %v674_v29 = vadd.f32 %v1010_v22, %v673_v23  ;;  %1025 = vpow2.f32 %v661_v18  ;;  %v671_v36 = vmul.f32 1.442695, %v640_v26 }
 0x105   : > { %v1016_v30 = vpop.eup %1015  ;;  %1027 = vpow2.f32 %v669_v20 }
 0x106   : > { %v1018_v32 = vpop.eup %1017  ;;  %v675_v33 = vadd.f32 %v1012_v25, %v674_v29  ;;  %v676_v34 = vadd.f32 %v1016_v30, %v1014_v28  ;;  %1029 = vpow2.f32 %v647_v24 }
 0x107   : > { %v1020_v35 = vpop.eup %1019  ;;  %1031 = vpow2.f32 %v655_v27 }
 0x108   : > { %v1022_v37 = vpop.eup %1021  ;;  %1033 = vrcp.f32 %v675_v33  ;;  %v677_v38 = vadd.f32 %v1018_v32, %v676_v34 }
 0x109   : > { %v1024_v39 = vpop.eup %1023  ;;  %1035 = vpow2.f32 %v663_v31 }
 0x10a   : > { %v1026_v40 = vpop.eup %1025  ;;  %v678_v41 = vadd.f32 %v1020_v35, %v677_v38  ;;  %v679_v42 = vadd.f32 %v1024_v39, %v1022_v37  ;;  %1037 = vpow2.f32 %v671_v36 }
 0x10b   : > { %v1028_v43 = vpop.eup %1027 }
 0x10c   : > { %v1030_v44 = vpop.eup %1029  ;;  %1039 = vrcp.f32 %v678_v41  ;;  %v680_v45 = vadd.f32 %v1026_v40, %v679_v42 }
 0x10d   : > { %v1032_v46 = vpop.eup %1031 }
 0x10e   : > { %v1034_v47 = vpop.eup %1033  ;;  %v681_v48 = vadd.f32 %v1028_v43, %v680_v45  ;;  %v682_v49 = vadd.f32 %v1032_v46, %v1030_v44 }
 0x10f   : > { %v1036_v50 = vpop.eup %1035  ;;  %v689_v51 = vmul.f32 %v1034_v47, %v675_v33 }
 0x110   : > { %1041 = vrcp.f32 %v681_v48  ;;  %v683_v52 = vadd.f32 %v1036_v50, %v682_v49  ;;  %v1038_v53 = vpop.eup %1037 }
 0x111   : > { %v693_v54 = vsub.f32 2.0, %v689_v51 }
 0x112   : > { %v1040_v55 = vpop.eup %1039  ;;  %v684_v56 = vadd.f32 %v1038_v53, %v683_v52 }
 0x113   : > { %v697_v57 = vmul.f32 %v1034_v47, %v693_v54  ;;  %v690_v58 = vmul.f32 %v1040_v55, %v678_v41 }
 0x114   : > { %1043 = vrcp.f32 %v684_v56 }
 0x115   : > { %v701_v59 = vmul.f32 %v1006_v17, %v697_v57  ;;  %v705_v60 = vmul.f32 %v1008_v19, %v697_v57  ;;  %v709_v61 = vmul.f32 %v1010_v22, %v697_v57  ;;  %v713_v63 = vmul.f32 %v1012_v25, %v697_v57 }
 0x116   : > { %v1042_v62 = vpop.eup %1041  ;;  %v694_v0 = vsub.f32 2.0, %v690_v58 }
 0x117   : > { %717 = vst [vmem:[%s1417_s4] sm:$0xff] %v701_v59  ;;  %v691_v1 = vmul.f32 %v1042_v62, %v681_v48 }
 0x118   : > { %721 = vst [vmem:[%s1417_s4 + $0x20] sm:$0xff] %v705_v60  ;;  %v698_v2 = vmul.f32 %v1040_v55, %v694_v0 }
 0x119   : > { %725 = vst [vmem:[%s1417_s4 + $0x40] sm:$0xff] %v709_v61  ;;  %v695_v3 = vsub.f32 2.0, %v691_v1 }
 0x11a   : > { %v1044_v4 = vpop.eup %1043  ;;  %729 = vst [vmem:[%s1417_s4 + $0x60] sm:$0xff] %v713_v63  ;;  %v702_v5 = vmul.f32 %v1014_v28, %v698_v2  ;;  %v706_v6 = vmul.f32 %v1016_v30, %v698_v2  ;;  %v710_v7 = vmul.f32 %v1018_v32, %v698_v2  ;;  %v714_v8 = vmul.f32 %v1020_v35, %v698_v2 }
 0x11b   : > { %v699_v9 = vmul.f32 %v1042_v62, %v695_v3  ;;  %v692_v10 = vmul.f32 %v1044_v4, %v684_v56 }
 0x11c   : > { %718 = vst [vmem:[%s1417_s4 + $0x8] sm:$0xff] %v702_v5 }
 0x11d   : > { %722 = vst [vmem:[%s1417_s4 + $0x28] sm:$0xff] %v706_v6  ;;  %v703_v11 = vmul.f32 %v1022_v37, %v699_v9  ;;  %v707_v12 = vmul.f32 %v1024_v39, %v699_v9  ;;  %v711_v13 = vmul.f32 %v1026_v40, %v699_v9  ;;  %v696_v14 = vsub.f32 2.0, %v692_v10 }
 0x11e   : > { %726 = vst [vmem:[%s1417_s4 + $0x48] sm:$0xff] %v710_v7  ;;  %v715_v15 = vmul.f32 %v1028_v43, %v699_v9 }
 0x11f   : > { %730 = vst [vmem:[%s1417_s4 + $0x68] sm:$0xff] %v714_v8  ;;  %v700_v16 = vmul.f32 %v1044_v4, %v696_v14 }
 0x120   : > { %719 = vst [vmem:[%s1417_s4 + $0x10] sm:$0xff] %v703_v11 }
 0x121   : > { %723 = vst [vmem:[%s1417_s4 + $0x30] sm:$0xff] %v707_v12  ;;  %v704_v17 = vmul.f32 %v1030_v44, %v700_v16  ;;  %v708_v18 = vmul.f32 %v1032_v46, %v700_v16  ;;  %v712_v19 = vmul.f32 %v1036_v50, %v700_v16  ;;  %v716_v20 = vmul.f32 %v1038_v53, %v700_v16 }
 0x122   : > { %727 = vst [vmem:[%s1417_s4 + $0x50] sm:$0xff] %v711_v13 }
 0x123   : > { %731 = vst [vmem:[%s1417_s4 + $0x70] sm:$0xff] %v715_v15 }
 0x124   : > { %720 = vst [vmem:[%s1417_s4 + $0x18] sm:$0xff] %v704_v17 }
 0x125   : > { %724 = vst [vmem:[%s1417_s4 + $0x38] sm:$0xff] %v708_v18 }
 0x126   : > { %728 = vst [vmem:[%s1417_s4 + $0x58] sm:$0xff] %v712_v19 }
 0x127   : > { %732 = vst [vmem:[%s1417_s4 + $0x78] sm:$0xff] %v716_v20 }
 0x128   : > { %1072 = shalt.err (!%p1069_p7)
}
 0x129   : > { %s1142_s24 = smov 512   ;;  %s1143_s4 = smov 1024  }
 0x12a   : > { %s1144_s15 = smov 32  }
 0x12b   : > { %928 = dma.vmem_to_hbm [thread:$0]  (%p1216_p3), %s749_s8, 2048, %s751_s9, %s734_s10, %s1142_s24, %s1143_s4, %s1144_s15  }
 0x12c PF: > { %p934_p9 = scmp.ge.s32.totalorder %s1139_s19, 2  ;;  %s765_s16 = sand.u32 1, %s1111_s12  }
 0x12d   : > { %s766_s6 = scalar_lea.sflag [#allocation3], %s765_s16 }
 0x12e   : > { %p931_p10 = pnand %p934_p9, %p1225_p8 }
 0x130   : > { %p932_p11 = pneg %p931_p10 }
 0x132   : > { %1106 = dma.done.wait (%p932_p11), %s766_s6, 2048  }
 0x133   : > { %1108 = vsyncadd (%p932_p11), %s766_s6, 4294965248  ;;  %s16_s19 = sadd.s32 1, %s1139_s19   ;;  %s1485_s12 = smov %s1115_s13 }
 0x134   : > { %p13_p12 = scmp.ge.s32.totalorder %s16_s19, 6   ;;  %s1486_s13 = smov %s1119_s14 }
 0x135   : > { %s1487_s14 = smov %s1234_s30  ;;  %s1488_s15 = smov %s1131_s17 }
 0x136   : > { %s1489_s16 = smov %s1135_s18  ;;  %s1490_s17 = smov %s1493_s22 }
 0x137   : > { %s1491_s18 = smov %s1497_s23  ;;  %15 = sbr.rel (!%p13_p12) target bundleno = 5 (0x5), region = 67 }
 0x13c   :  { %772 = vsyncpa [#allocation3], 1 }
 0x13d   :  { %774 = vsyncpa [#allocation3 + $0x1], 1 }

</bundles_post_ra>
